<compile_context>
chip_gen: v7x
topology: tpu7x:2x2x1
jax: 0.10.0
libtpu: 0.0.40
codegen_flags: <defaults>
</compile_context>

<pallas_src>
import functools

import jax
import jax.numpy as jnp
from jax import lax
from jax.experimental import pallas as pl
from jax.experimental.pallas import tpu as pltpu

_LANE = 128        # vreg lane width; batch rows are lane-dense
_STRIP = 16        # sublane-rows per inner strip (2 vreg-rows -> ~12-14 live vregs)
_MAX_TBS = 2048    # max sublane-groups per grid step (2048*128 rows; ~6 MB VMEM dbl-buffered)
_UNROLL = 4        # partial unroll of the strip loop (LLO scheduling visibility)

# Packed parameter layout (flat f32[55], SMEM via scalar prefetch):
#   [ 0:20)  W1^T (2,10) row-major : p[10*k + j] = W1[j, k]
#   [20:30)  b1 (10,)
#   [30:50)  W2^T (10,2) row-major : p[30 + 2*j + m] = W2[m, j]
#   [50:52)  b2 (2,)
#   [52:54)  W3 row (2,)           : p[52 + k] = W3[0, k]
#   [54]     b3
_N_PARAMS = 55


def _round_up(x, m):
    return -(-x // m) * m


def _mlp_cos_kernel(p_ref, x_ref, o_ref):
    """cos(fc3(relu(fc2(relu(fc1(x)))))) for one batch tile.

    p_ref: (55,) f32 in SMEM    -- packed weights/biases (scalar prefetch)
    x_ref: (2, TBS, 128) f32    -- feature-major, batch dense over (sublane, lane)
    o_ref: (TBS, 128) f32       -- lane-dense output tile (unmasked vst)
    """
    tbs = o_ref.shape[0]
    n_strips = tbs // _STRIP          # tbs is always a multiple of _STRIP

    # Hoist all packed scalars out of the strip loop (one round of SMEM sld's).
    w1x0 = [p_ref[j] for j in range(10)]
    w1x1 = [p_ref[10 + j] for j in range(10)]
    b1 = [p_ref[20 + j] for j in range(10)]
    w2c0 = [p_ref[30 + 2 * j] for j in range(10)]
    w2c1 = [p_ref[31 + 2 * j] for j in range(10)]
    b2_0, b2_1 = p_ref[50], p_ref[51]
    w3_0, w3_1, b3 = p_ref[52], p_ref[53], p_ref[54]

    def strip(c, carry):
        r0 = pl.multiple_of(c * _STRIP, _STRIP)
        rows = pl.ds(r0, _STRIP)
        x0 = x_ref[0, rows, :]        # (STRIP, 128): feature 0 for this strip of rows
        x1 = x_ref[1, rows, :]        # (STRIP, 128): feature 1

        # fc1 (2->10, ReLU) fused with the fc2 contraction (10->2): only two
        # accumulators stay live; the j=0 term initializes them directly.
        h = jnp.maximum(x0 * w1x0[0] + x1 * w1x1[0] + b1[0], 0.0)
        acc0 = h * w2c0[0]
        acc1 = h * w2c1[0]
        for j in range(1, 10):        # fully unrolled scalar*vector VPU math
            h = jnp.maximum(x0 * w1x0[j] + x1 * w1x1[j] + b1[j], 0.0)
            acc0 = acc0 + h * w2c0[j]
            acc1 = acc1 + h * w2c1[j]

        h2_0 = jnp.maximum(acc0 + b2_0, 0.0)
        h2_1 = jnp.maximum(acc1 + b2_1, 0.0)
        # fc3 (2->1) + cos (cos rides the EUP slot; effectively free next to the VALU work)
        o_ref[rows, :] = jnp.cos(h2_0 * w3_0 + h2_1 * w3_1 + b3)
        return carry

    lax.fori_loop(0, n_strips, strip, 0, unroll=min(_UNROLL, n_strips))


def pack_params(params):
    """Pack PyTorch-convention weights into the flat f32[55] SMEM buffer."""
    flat = jnp.concatenate([
        params["W1"].T.reshape(-1),   # (2,10) row-major
        params["b1"].reshape(-1),
        params["W2"].T.reshape(-1),   # (10,2) row-major
        params["b2"].reshape(-1),
        params["W3"].reshape(-1),     # (2,)
        params["b3"].reshape(-1),
    ]).astype(jnp.float32)
    assert flat.shape == (_N_PARAMS,)
    return flat


@jax.jit
def net_forward(x, params):
    """x: (B, 2) float32 (PyTorch layout). Returns (B, 1) float32."""
    B = x.shape[0]
    p_flat = pack_params(params)

    # --- choose the batch tiling (all static Python ints under jit) ------------------
    nb = pl.cdiv(B, _LANE)                    # 128-lane batch groups needed
    n_tiles = pl.cdiv(nb, _MAX_TBS)           # enough tiles that each fits _MAX_TBS
    if nb >= 2 * _STRIP:
        n_tiles = max(n_tiles, 2)             # v7x: >=2 grid steps so both TCs engage
    tbs = _round_up(pl.cdiv(nb, n_tiles), _STRIP)   # balanced, strip-aligned tile height
    grid = pl.cdiv(nb, tbs)
    nb_pad = grid * tbs
    b_pad = nb_pad * _LANE

    # Feature-major, lane-dense batch layout (single fused pad+transpose pass under jit).
    # TODO(synk): produce this layout upstream to remove the extra HBM pass entirely.
    x_fm = jnp.pad(x.astype(jnp.float32), ((0, b_pad - B), (0, 0))).T
    x_fm = x_fm.reshape(2, nb_pad, _LANE)

    grid_spec = pltpu.PrefetchScalarGridSpec(
        num_scalar_prefetch=1,                # packed params -> SMEM, single tiny operand
        grid=(grid,),
        in_specs=[pl.BlockSpec((2, tbs, _LANE), lambda i, p: (0, i, 0))],
        out_specs=pl.BlockSpec((tbs, _LANE), lambda i, p: (i, 0)),
    )
    out_fm = pl.pallas_call(
        _mlp_cos_kernel,
        out_shape=jax.ShapeDtypeStruct((nb_pad, _LANE), jnp.float32),
        grid_spec=grid_spec,
        compiler_params=pltpu.CompilerParams(
            dimension_semantics=("parallel",)),   # shard batch tiles across v7x's 2 TCs
    )(p_flat, x_fm)

    return out_fm.reshape(b_pad)[:B].reshape(B, 1)


def init_params(key):
    """Deterministic params in PyTorch nn.Linear convention (out, in)."""
    k = jax.random.split(key, 6)
    s = 0.5
    return {
        "W1": s * jax.random.normal(k[0], (10, 2), jnp.float32),
        "b1": s * jax.random.normal(k[1], (10,), jnp.float32),
        "W2": s * jax.random.normal(k[2], (2, 10), jnp.float32),
        "b2": s * jax.random.normal(k[3], (2,), jnp.float32),
        "W3": s * jax.random.normal(k[4], (1, 2), jnp.float32),
        "b3": s * jax.random.normal(k[5], (1,), jnp.float32),
    }


def net_forward_ref(x, p):
    h1 = jnp.maximum(x @ p["W1"].T + p["b1"], 0.0)
    h2 = jnp.maximum(h1 @ p["W2"].T + p["b2"], 0.0)
    return jnp.cos(h2 @ p["W3"].T + p["b3"])


if __name__ == "__main__":
    key = jax.random.PRNGKey(0)
    kx, kp = jax.random.split(key)
    params = init_params(kp)

    # B=8:    tiny case (single tile, heavy padding path)
    # B=1000: ragged batch, single tile, single strip
    # B=9000: two grid steps (pipelined batch grid + megacore split) with multi-strip tiles
    for B in (8, 1000, 9000):
        x = jax.random.normal(jax.random.fold_in(kx, B), (B, 2), jnp.float32)
        out = jax.block_until_ready(net_forward(x, params))
        ref = net_forward_ref(x, params)
        assert out.shape == (B, 1), out.shape
        assert jnp.allclose(out, ref, atol=1e-5, rtol=1e-5), (B, out[:4], ref[:4])

    print("KERNEL_OK")
</pallas_src>

<mosaic_0001>
module attributes {stable_mosaic.version = 11 : i64} {
  func.func @_mlp_cos_kernel(%arg0: i32, %arg1: memref<55xf32, #tpu.memory_space<smem>>, %arg2: memref<2x16x128xf32, #tpu.memory_space<vmem>>, %arg3: memref<16x128xf32, #tpu.memory_space<vmem>>) attributes {dimension_semantics = [#tpu.dimension_semantics<parallel>], iteration_bounds = array<i64: 1>, scalar_prefetch = 1 : i64, scratch_operands = 0 : i64, tpu.core_type = #tpu.core_type<tc>, window_params = [{transform_indices = @transform_0, window_bounds = array<i64: 2, 16, 128>}, {transform_indices = @transform_1, window_bounds = array<i64: 16, 128>}]} {
    %c0 = arith.constant 0 : index
    %0 = memref.load %arg1[%c0] : memref<55xf32, #tpu.memory_space<smem>>
    %c1 = arith.constant 1 : index
    %1 = memref.load %arg1[%c1] : memref<55xf32, #tpu.memory_space<smem>>
    %c2 = arith.constant 2 : index
    %2 = memref.load %arg1[%c2] : memref<55xf32, #tpu.memory_space<smem>>
    %c3 = arith.constant 3 : index
    %3 = memref.load %arg1[%c3] : memref<55xf32, #tpu.memory_space<smem>>
    %c4 = arith.constant 4 : index
    %4 = memref.load %arg1[%c4] : memref<55xf32, #tpu.memory_space<smem>>
    %c5 = arith.constant 5 : index
    %5 = memref.load %arg1[%c5] : memref<55xf32, #tpu.memory_space<smem>>
    %c6 = arith.constant 6 : index
    %6 = memref.load %arg1[%c6] : memref<55xf32, #tpu.memory_space<smem>>
    %c7 = arith.constant 7 : index
    %7 = memref.load %arg1[%c7] : memref<55xf32, #tpu.memory_space<smem>>
    %c8 = arith.constant 8 : index
    %8 = memref.load %arg1[%c8] : memref<55xf32, #tpu.memory_space<smem>>
    %c9 = arith.constant 9 : index
    %9 = memref.load %arg1[%c9] : memref<55xf32, #tpu.memory_space<smem>>
    %c10 = arith.constant 10 : index
    %10 = memref.load %arg1[%c10] : memref<55xf32, #tpu.memory_space<smem>>
    %c11 = arith.constant 11 : index
    %11 = memref.load %arg1[%c11] : memref<55xf32, #tpu.memory_space<smem>>
    %c12 = arith.constant 12 : index
    %12 = memref.load %arg1[%c12] : memref<55xf32, #tpu.memory_space<smem>>
    %c13 = arith.constant 13 : index
    %13 = memref.load %arg1[%c13] : memref<55xf32, #tpu.memory_space<smem>>
    %c14 = arith.constant 14 : index
    %14 = memref.load %arg1[%c14] : memref<55xf32, #tpu.memory_space<smem>>
    %c15 = arith.constant 15 : index
    %15 = memref.load %arg1[%c15] : memref<55xf32, #tpu.memory_space<smem>>
    %c16 = arith.constant 16 : index
    %16 = memref.load %arg1[%c16] : memref<55xf32, #tpu.memory_space<smem>>
    %c17 = arith.constant 17 : index
    %17 = memref.load %arg1[%c17] : memref<55xf32, #tpu.memory_space<smem>>
    %c18 = arith.constant 18 : index
    %18 = memref.load %arg1[%c18] : memref<55xf32, #tpu.memory_space<smem>>
    %c19 = arith.constant 19 : index
    %19 = memref.load %arg1[%c19] : memref<55xf32, #tpu.memory_space<smem>>
    %c20 = arith.constant 20 : index
    %20 = memref.load %arg1[%c20] : memref<55xf32, #tpu.memory_space<smem>>
    %c21 = arith.constant 21 : index
    %21 = memref.load %arg1[%c21] : memref<55xf32, #tpu.memory_space<smem>>
    %c22 = arith.constant 22 : index
    %22 = memref.load %arg1[%c22] : memref<55xf32, #tpu.memory_space<smem>>
    %c23 = arith.constant 23 : index
    %23 = memref.load %arg1[%c23] : memref<55xf32, #tpu.memory_space<smem>>
    %c24 = arith.constant 24 : index
    %24 = memref.load %arg1[%c24] : memref<55xf32, #tpu.memory_space<smem>>
    %c25 = arith.constant 25 : index
    %25 = memref.load %arg1[%c25] : memref<55xf32, #tpu.memory_space<smem>>
    %c26 = arith.constant 26 : index
    %26 = memref.load %arg1[%c26] : memref<55xf32, #tpu.memory_space<smem>>
    %c27 = arith.constant 27 : index
    %27 = memref.load %arg1[%c27] : memref<55xf32, #tpu.memory_space<smem>>
    %c28 = arith.constant 28 : index
    %28 = memref.load %arg1[%c28] : memref<55xf32, #tpu.memory_space<smem>>
    %c29 = arith.constant 29 : index
    %29 = memref.load %arg1[%c29] : memref<55xf32, #tpu.memory_space<smem>>
    %c30 = arith.constant 30 : index
    %30 = memref.load %arg1[%c30] : memref<55xf32, #tpu.memory_space<smem>>
    %c32 = arith.constant 32 : index
    %31 = memref.load %arg1[%c32] : memref<55xf32, #tpu.memory_space<smem>>
    %c34 = arith.constant 34 : index
    %32 = memref.load %arg1[%c34] : memref<55xf32, #tpu.memory_space<smem>>
    %c36 = arith.constant 36 : index
    %33 = memref.load %arg1[%c36] : memref<55xf32, #tpu.memory_space<smem>>
    %c38 = arith.constant 38 : index
    %34 = memref.load %arg1[%c38] : memref<55xf32, #tpu.memory_space<smem>>
    %c40 = arith.constant 40 : index
    %35 = memref.load %arg1[%c40] : memref<55xf32, #tpu.memory_space<smem>>
    %c42 = arith.constant 42 : index
    %36 = memref.load %arg1[%c42] : memref<55xf32, #tpu.memory_space<smem>>
    %c44 = arith.constant 44 : index
    %37 = memref.load %arg1[%c44] : memref<55xf32, #tpu.memory_space<smem>>
    %c46 = arith.constant 46 : index
    %38 = memref.load %arg1[%c46] : memref<55xf32, #tpu.memory_space<smem>>
    %c48 = arith.constant 48 : index
    %39 = memref.load %arg1[%c48] : memref<55xf32, #tpu.memory_space<smem>>
    %c31 = arith.constant 31 : index
    %40 = memref.load %arg1[%c31] : memref<55xf32, #tpu.memory_space<smem>>
    %c33 = arith.constant 33 : index
    %41 = memref.load %arg1[%c33] : memref<55xf32, #tpu.memory_space<smem>>
    %c35 = arith.constant 35 : index
    %42 = memref.load %arg1[%c35] : memref<55xf32, #tpu.memory_space<smem>>
    %c37 = arith.constant 37 : index
    %43 = memref.load %arg1[%c37] : memref<55xf32, #tpu.memory_space<smem>>
    %c39 = arith.constant 39 : index
    %44 = memref.load %arg1[%c39] : memref<55xf32, #tpu.memory_space<smem>>
    %c41 = arith.constant 41 : index
    %45 = memref.load %arg1[%c41] : memref<55xf32, #tpu.memory_space<smem>>
    %c43 = arith.constant 43 : index
    %46 = memref.load %arg1[%c43] : memref<55xf32, #tpu.memory_space<smem>>
    %c45 = arith.constant 45 : index
    %47 = memref.load %arg1[%c45] : memref<55xf32, #tpu.memory_space<smem>>
    %c47 = arith.constant 47 : index
    %48 = memref.load %arg1[%c47] : memref<55xf32, #tpu.memory_space<smem>>
    %c49 = arith.constant 49 : index
    %49 = memref.load %arg1[%c49] : memref<55xf32, #tpu.memory_space<smem>>
    %c50 = arith.constant 50 : index
    %50 = memref.load %arg1[%c50] : memref<55xf32, #tpu.memory_space<smem>>
    %c51 = arith.constant 51 : index
    %51 = memref.load %arg1[%c51] : memref<55xf32, #tpu.memory_space<smem>>
    %c52 = arith.constant 52 : index
    %52 = memref.load %arg1[%c52] : memref<55xf32, #tpu.memory_space<smem>>
    %c53 = arith.constant 53 : index
    %53 = memref.load %arg1[%c53] : memref<55xf32, #tpu.memory_space<smem>>
    %c54 = arith.constant 54 : index
    %54 = memref.load %arg1[%c54] : memref<55xf32, #tpu.memory_space<smem>>
    %c0_i32 = arith.constant 0 : i32
    %c16_i32 = arith.constant 16 : i32
    %55 = arith.muli %c0_i32, %c16_i32 : i32
    %56 = tpu.assume_multiple %55, 16 : i32
    %c0_0 = arith.constant 0 : index
    %57 = arith.index_cast %56 : i32 to index
    %c0_1 = arith.constant 0 : index
    %58 = vector.load %arg2[%c0_0, %57, %c0_1] : memref<2x16x128xf32, #tpu.memory_space<vmem>>, vector<1x16x128xf32>
    %59 = vector.shape_cast %58 : vector<1x16x128xf32> to vector<16x128xf32>
    %c1_2 = arith.constant 1 : index
    %60 = arith.index_cast %56 : i32 to index
    %c0_3 = arith.constant 0 : index
    %61 = vector.load %arg2[%c1_2, %60, %c0_3] : memref<2x16x128xf32, #tpu.memory_space<vmem>>, vector<1x16x128xf32>
    %62 = vector.shape_cast %61 : vector<1x16x128xf32> to vector<16x128xf32>
    %63 = vector.broadcast %0 : f32 to vector<16x128xf32>
    %64 = arith.mulf %59, %63 : vector<16x128xf32>
    %65 = vector.broadcast %10 : f32 to vector<16x128xf32>
    %66 = arith.mulf %62, %65 : vector<16x128xf32>
    %67 = arith.addf %64, %66 : vector<16x128xf32>
    %68 = vector.broadcast %20 : f32 to vector<16x128xf32>
    %69 = arith.addf %67, %68 : vector<16x128xf32>
    %cst = arith.constant 0.000000e+00 : f32
    %70 = vector.broadcast %cst : f32 to vector<16x128xf32>
    %71 = arith.maximumf %69, %70 : vector<16x128xf32>
    %72 = vector.broadcast %30 : f32 to vector<16x128xf32>
    %73 = arith.mulf %71, %72 : vector<16x128xf32>
    %74 = vector.broadcast %40 : f32 to vector<16x128xf32>
    %75 = arith.mulf %71, %74 : vector<16x128xf32>
    %76 = vector.broadcast %1 : f32 to vector<16x128xf32>
    %77 = arith.mulf %59, %76 : vector<16x128xf32>
    %78 = vector.broadcast %11 : f32 to vector<16x128xf32>
    %79 = arith.mulf %62, %78 : vector<16x128xf32>
    %80 = arith.addf %77, %79 : vector<16x128xf32>
    %81 = vector.broadcast %21 : f32 to vector<16x128xf32>
    %82 = arith.addf %80, %81 : vector<16x128xf32>
    %cst_4 = arith.constant 0.000000e+00 : f32
    %83 = vector.broadcast %cst_4 : f32 to vector<16x128xf32>
    %84 = arith.maximumf %82, %83 : vector<16x128xf32>
    %85 = vector.broadcast %31 : f32 to vector<16x128xf32>
    %86 = arith.mulf %84, %85 : vector<16x128xf32>
    %87 = arith.addf %73, %86 : vector<16x128xf32>
    %88 = vector.broadcast %41 : f32 to vector<16x128xf32>
    %89 = arith.mulf %84, %88 : vector<16x128xf32>
    %90 = arith.addf %75, %89 : vector<16x128xf32>
    %91 = vector.broadcast %2 : f32 to vector<16x128xf32>
    %92 = arith.mulf %59, %91 : vector<16x128xf32>
    %93 = vector.broadcast %12 : f32 to vector<16x128xf32>
    %94 = arith.mulf %62, %93 : vector<16x128xf32>
    %95 = arith.addf %92, %94 : vector<16x128xf32>
    %96 = vector.broadcast %22 : f32 to vector<16x128xf32>
    %97 = arith.addf %95, %96 : vector<16x128xf32>
    %cst_5 = arith.constant 0.000000e+00 : f32
    %98 = vector.broadcast %cst_5 : f32 to vector<16x128xf32>
    %99 = arith.maximumf %97, %98 : vector<16x128xf32>
    %100 = vector.broadcast %32 : f32 to vector<16x128xf32>
    %101 = arith.mulf %99, %100 : vector<16x128xf32>
    %102 = arith.addf %87, %101 : vector<16x128xf32>
    %103 = vector.broadcast %42 : f32 to vector<16x128xf32>
    %104 = arith.mulf %99, %103 : vector<16x128xf32>
    %105 = arith.addf %90, %104 : vector<16x128xf32>
    %106 = vector.broadcast %3 : f32 to vector<16x128xf32>
    %107 = arith.mulf %59, %106 : vector<16x128xf32>
    %108 = vector.broadcast %13 : f32 to vector<16x128xf32>
    %109 = arith.mulf %62, %108 : vector<16x128xf32>
    %110 = arith.addf %107, %109 : vector<16x128xf32>
    %111 = vector.broadcast %23 : f32 to vector<16x128xf32>
    %112 = arith.addf %110, %111 : vector<16x128xf32>
    %cst_6 = arith.constant 0.000000e+00 : f32
    %113 = vector.broadcast %cst_6 : f32 to vector<16x128xf32>
    %114 = arith.maximumf %112, %113 : vector<16x128xf32>
    %115 = vector.broadcast %33 : f32 to vector<16x128xf32>
    %116 = arith.mulf %114, %115 : vector<16x128xf32>
    %117 = arith.addf %102, %116 : vector<16x128xf32>
    %118 = vector.broadcast %43 : f32 to vector<16x128xf32>
    %119 = arith.mulf %114, %118 : vector<16x128xf32>
    %120 = arith.addf %105, %119 : vector<16x128xf32>
    %121 = vector.broadcast %4 : f32 to vector<16x128xf32>
    %122 = arith.mulf %59, %121 : vector<16x128xf32>
    %123 = vector.broadcast %14 : f32 to vector<16x128xf32>
    %124 = arith.mulf %62, %123 : vector<16x128xf32>
    %125 = arith.addf %122, %124 : vector<16x128xf32>
    %126 = vector.broadcast %24 : f32 to vector<16x128xf32>
    %127 = arith.addf %125, %126 : vector<16x128xf32>
    %cst_7 = arith.constant 0.000000e+00 : f32
    %128 = vector.broadcast %cst_7 : f32 to vector<16x128xf32>
    %129 = arith.maximumf %127, %128 : vector<16x128xf32>
    %130 = vector.broadcast %34 : f32 to vector<16x128xf32>
    %131 = arith.mulf %129, %130 : vector<16x128xf32>
    %132 = arith.addf %117, %131 : vector<16x128xf32>
    %133 = vector.broadcast %44 : f32 to vector<16x128xf32>
    %134 = arith.mulf %129, %133 : vector<16x128xf32>
    %135 = arith.addf %120, %134 : vector<16x128xf32>
    %136 = vector.broadcast %5 : f32 to vector<16x128xf32>
    %137 = arith.mulf %59, %136 : vector<16x128xf32>
    %138 = vector.broadcast %15 : f32 to vector<16x128xf32>
    %139 = arith.mulf %62, %138 : vector<16x128xf32>
    %140 = arith.addf %137, %139 : vector<16x128xf32>
    %141 = vector.broadcast %25 : f32 to vector<16x128xf32>
    %142 = arith.addf %140, %141 : vector<16x128xf32>
    %cst_8 = arith.constant 0.000000e+00 : f32
    %143 = vector.broadcast %cst_8 : f32 to vector<16x128xf32>
    %144 = arith.maximumf %142, %143 : vector<16x128xf32>
    %145 = vector.broadcast %35 : f32 to vector<16x128xf32>
    %146 = arith.mulf %144, %145 : vector<16x128xf32>
    %147 = arith.addf %132, %146 : vector<16x128xf32>
    %148 = vector.broadcast %45 : f32 to vector<16x128xf32>
    %149 = arith.mulf %144, %148 : vector<16x128xf32>
    %150 = arith.addf %135, %149 : vector<16x128xf32>
    %151 = vector.broadcast %6 : f32 to vector<16x128xf32>
    %152 = arith.mulf %59, %151 : vector<16x128xf32>
    %153 = vector.broadcast %16 : f32 to vector<16x128xf32>
    %154 = arith.mulf %62, %153 : vector<16x128xf32>
    %155 = arith.addf %152, %154 : vector<16x128xf32>
    %156 = vector.broadcast %26 : f32 to vector<16x128xf32>
    %157 = arith.addf %155, %156 : vector<16x128xf32>
    %cst_9 = arith.constant 0.000000e+00 : f32
    %158 = vector.broadcast %cst_9 : f32 to vector<16x128xf32>
    %159 = arith.maximumf %157, %158 : vector<16x128xf32>
    %160 = vector.broadcast %36 : f32 to vector<16x128xf32>
    %161 = arith.mulf %159, %160 : vector<16x128xf32>
    %162 = arith.addf %147, %161 : vector<16x128xf32>
    %163 = vector.broadcast %46 : f32 to vector<16x128xf32>
    %164 = arith.mulf %159, %163 : vector<16x128xf32>
    %165 = arith.addf %150, %164 : vector<16x128xf32>
    %166 = vector.broadcast %7 : f32 to vector<16x128xf32>
    %167 = arith.mulf %59, %166 : vector<16x128xf32>
    %168 = vector.broadcast %17 : f32 to vector<16x128xf32>
    %169 = arith.mulf %62, %168 : vector<16x128xf32>
    %170 = arith.addf %167, %169 : vector<16x128xf32>
    %171 = vector.broadcast %27 : f32 to vector<16x128xf32>
    %172 = arith.addf %170, %171 : vector<16x128xf32>
    %cst_10 = arith.constant 0.000000e+00 : f32
    %173 = vector.broadcast %cst_10 : f32 to vector<16x128xf32>
    %174 = arith.maximumf %172, %173 : vector<16x128xf32>
    %175 = vector.broadcast %37 : f32 to vector<16x128xf32>
    %176 = arith.mulf %174, %175 : vector<16x128xf32>
    %177 = arith.addf %162, %176 : vector<16x128xf32>
    %178 = vector.broadcast %47 : f32 to vector<16x128xf32>
    %179 = arith.mulf %174, %178 : vector<16x128xf32>
    %180 = arith.addf %165, %179 : vector<16x128xf32>
    %181 = vector.broadcast %8 : f32 to vector<16x128xf32>
    %182 = arith.mulf %59, %181 : vector<16x128xf32>
    %183 = vector.broadcast %18 : f32 to vector<16x128xf32>
    %184 = arith.mulf %62, %183 : vector<16x128xf32>
    %185 = arith.addf %182, %184 : vector<16x128xf32>
    %186 = vector.broadcast %28 : f32 to vector<16x128xf32>
    %187 = arith.addf %185, %186 : vector<16x128xf32>
    %cst_11 = arith.constant 0.000000e+00 : f32
    %188 = vector.broadcast %cst_11 : f32 to vector<16x128xf32>
    %189 = arith.maximumf %187, %188 : vector<16x128xf32>
    %190 = vector.broadcast %38 : f32 to vector<16x128xf32>
    %191 = arith.mulf %189, %190 : vector<16x128xf32>
    %192 = arith.addf %177, %191 : vector<16x128xf32>
    %193 = vector.broadcast %48 : f32 to vector<16x128xf32>
    %194 = arith.mulf %189, %193 : vector<16x128xf32>
    %195 = arith.addf %180, %194 : vector<16x128xf32>
    %196 = vector.broadcast %9 : f32 to vector<16x128xf32>
    %197 = arith.mulf %59, %196 : vector<16x128xf32>
    %198 = vector.broadcast %19 : f32 to vector<16x128xf32>
    %199 = arith.mulf %62, %198 : vector<16x128xf32>
    %200 = arith.addf %197, %199 : vector<16x128xf32>
    %201 = vector.broadcast %29 : f32 to vector<16x128xf32>
    %202 = arith.addf %200, %201 : vector<16x128xf32>
    %cst_12 = arith.constant 0.000000e+00 : f32
    %203 = vector.broadcast %cst_12 : f32 to vector<16x128xf32>
    %204 = arith.maximumf %202, %203 : vector<16x128xf32>
    %205 = vector.broadcast %39 : f32 to vector<16x128xf32>
    %206 = arith.mulf %204, %205 : vector<16x128xf32>
    %207 = arith.addf %192, %206 : vector<16x128xf32>
    %208 = vector.broadcast %49 : f32 to vector<16x128xf32>
    %209 = arith.mulf %204, %208 : vector<16x128xf32>
    %210 = arith.addf %195, %209 : vector<16x128xf32>
    %211 = vector.broadcast %50 : f32 to vector<16x128xf32>
    %212 = arith.addf %207, %211 : vector<16x128xf32>
    %cst_13 = arith.constant 0.000000e+00 : f32
    %213 = vector.broadcast %cst_13 : f32 to vector<16x128xf32>
    %214 = arith.maximumf %212, %213 : vector<16x128xf32>
    %215 = vector.broadcast %51 : f32 to vector<16x128xf32>
    %216 = arith.addf %210, %215 : vector<16x128xf32>
    %cst_14 = arith.constant 0.000000e+00 : f32
    %217 = vector.broadcast %cst_14 : f32 to vector<16x128xf32>
    %218 = arith.maximumf %216, %217 : vector<16x128xf32>
    %219 = vector.broadcast %52 : f32 to vector<16x128xf32>
    %220 = arith.mulf %214, %219 : vector<16x128xf32>
    %221 = vector.broadcast %53 : f32 to vector<16x128xf32>
    %222 = arith.mulf %218, %221 : vector<16x128xf32>
    %223 = arith.addf %220, %222 : vector<16x128xf32>
    %224 = vector.broadcast %54 : f32 to vector<16x128xf32>
    %225 = arith.addf %223, %224 : vector<16x128xf32>
    %226 = math.cos %225 : vector<16x128xf32>
    %227 = arith.index_cast %56 : i32 to index
    %c0_15 = arith.constant 0 : index
    %228 = vector.load %arg3[%227, %c0_15] : memref<16x128xf32, #tpu.memory_space<vmem>>, vector<16x128xf32>
    tpu.vector_store %arg3[%227, %c0_15], %226 {strides = array<i32>} : memref<16x128xf32, #tpu.memory_space<vmem>>, vector<16x128xf32>,
    %c1_i32 = arith.constant 1 : i32
    return
  }
  func.func @transform_0(%arg0: i32, %arg1: memref<55xf32, #tpu.memory_space<smem>>) -> (i32, i32, i32) {
    %c0_i32 = arith.constant 0 : i32
    %c0_i32_0 = arith.constant 0 : i32
    %c0_i32_1 = arith.constant 0 : i32
    return %c0_i32, %arg0, %c0_i32_0 : i32, i32, i32
  }
  func.func @transform_1(%arg0: i32, %arg1: memref<55xf32, #tpu.memory_space<smem>>) -> (i32, i32) {
    %c0_i32 = arith.constant 0 : i32
    %c0_i32_0 = arith.constant 0 : i32
    return %arg0, %c0_i32 : i32, i32
  }
}

</mosaic_0001>

<bundles_post_ra>
// kernel: net_forward.1
= control target key start
LH: loop header
LB: loop body
LE: loop exit
PB: predicated region body
PF: predicated region fallthrough
CT: control target
= control target key end

     0   :  { %s977_s0 = inlined_call_operand.vmem [shape: f32[55], index: 0, kind: input, shape index: {}]   ;;  %s978_s1 = inlined_call_operand.vmem [shape: f32[2,16,128], index: 1, kind: input, shape index: {}]   ;;  %s979_s2 = inlined_call_operand.vmem [shape: f32[16,128], index: 2, kind: output, shape index: {}]  }
   0x1   :  { %s7_s11 = sshll.u32 %s977_s0, 4  ;;  %s8_s11 = int_to_ptr.vmem [resolvable:$true] %s7_s11 }
   0x2   :  { %s623_s12 = scalar_lea.vmem %s8_s11, 16  ;;  %p628_p1 = scmp.lt.s32.totalorder %s8_s11, %s8_s11 }
   0x3   :  { %p624_p0 = scmp.ne.s32.totalorder %s8_s11, %s623_s12  ;;  %p629_p2 = scmp.lt.s32.totalorder %s623_s12, %s623_s12 }
   0x5   :  { %p630_p3 = por %p629_p2, %p628_p1 }
   0x7   :  { %p631_p4 = pnand %p630_p3, %p624_p0 }
   0x9   :  { %634 = shalt.err (!%p631_p4)  }
   0xa   :  { %s637_s13 = smov [#allocation3]  }
   0xb   :  { %10 = dma.vmem_to_smem %s8_s11, 16, %s637_s13, [#allocation2] }
   0xc   :  { %635 = dma.done.wait [#allocation2], 16 }
   0xd   :  { %636 = vsyncadd [#allocation2], 4294967280 }
   0xe   :  { %12 = sfence }
   0xf   :  { %s15_s14 = sld [smem:[#allocation3]]  ;;  %s536_s15 = sld [smem:[#allocation3 + $0x1]]  ;;  %v677_v0 = vld [vmem:[%s978_s1] sm:$0xff]  ;;  %v682_v1 = vld [vmem:[%s978_s1 + $0x8] sm:$0xff]  ;;  %v690_v6 = vld [vmem:[%s978_s1 + $0x10] sm:$0xff] }
  0x10   :  { %s537_s16 = sld [smem:[#allocation3 + $0x2]]  ;;  %s662_s17 = sld [smem:[#allocation3 + $0x3]]  ;;  %v695_v7 = vld [vmem:[%s978_s1 + $0x18] sm:$0xff] }
  0x11   :  { %s664_s0 = sld [smem:[#allocation3 + $0x4]]  ;;  %s666_s18 = sld [smem:[#allocation3 + $0x5]] }
  0x12   :  { %s545_s19 = sld [smem:[#allocation3 + $0xa]]  ;;  %s668_s20 = sld [smem:[#allocation3 + $0xb]] }
  0x13   :  { %s670_s21 = sld [smem:[#allocation3 + $0xc]]  ;;  %s672_s22 = sld [smem:[#allocation3 + $0xd]] }
  0x14   :  { %s684_s27 = sld [smem:[#allocation3 + $0xe]]  ;;  %s701_s4 = sld [smem:[#allocation3 + $0x14]] }
  0x15   :  { %v76_v2 = vstv %s15_s14  ;;  %v95_v3 = vstv %s536_s15  ;;  %s703_s5 = sld [smem:[#allocation3 + $0x15]]  ;;  %s709_s1 = sld [smem:[#allocation3 + $0x16]] }
  0x16   :  { %v118_v4 = vstv %s537_s16  ;;  %v141_v5 = vstv %s662_s17  ;;  %v77_v8 = vmul.f32 %v76_v2, %v677_v0  ;;  %v78_v9 = vmul.f32 %v76_v2, %v682_v1  ;;  %s711_s6 = sld [smem:[#allocation3 + $0x17]]  ;;  %s730_s8 = sld [smem:[#allocation3 + $0x1e]] }
  0x17   :  { %v96_v10 = vmul.f32 %v95_v3, %v677_v0  ;;  %v97_v11 = vmul.f32 %v95_v3, %v682_v1  ;;  %v119_v12 = vmul.f32 %v118_v4, %v677_v0  ;;  %v120_v13 = vmul.f32 %v118_v4, %v682_v1  ;;  %s728_s7 = sld [smem:[#allocation3 + $0xf]]  ;;  %s732_s9 = sld [smem:[#allocation3 + $0x20]] }
  0x18   :  { %v164_v14 = vstv %s664_s0  ;;  %v187_v15 = vstv %s666_s18  ;;  %v79_v16 = vstv %s545_s19  ;;  %v98_v17 = vstv %s668_s20  ;;  %s738_s10 = sld [smem:[#allocation3 + $0x22]]  ;;  %s740_s11 = sld [smem:[#allocation3 + $0x24]] }
  0x19   :  { %v142_v18 = vmul.f32 %v141_v5, %v677_v0  ;;  %v143_v19 = vmul.f32 %v141_v5, %v682_v1  ;;  %v80_v20 = vmul.f32 %v690_v6, %v79_v16  ;;  %v81_v21 = vmul.f32 %v695_v7, %v79_v16  ;;  %s752_s12 = sld [smem:[#allocation3 + $0x1f]]  ;;  %s754_s13 = sld [smem:[#allocation3 + $0x21]] }
  0x1a   :  { %v99_v22 = vmul.f32 %v690_v6, %v98_v17  ;;  %v100_v23 = vmul.f32 %v695_v7, %v98_v17  ;;  %v121_v24 = vstv %s670_s21  ;;  %v144_v25 = vstv %s672_s22  ;;  %s756_s14 = sld [smem:[#allocation3 + $0x23]]  ;;  %s758_s15 = sld [smem:[#allocation3 + $0x25]] }
  0x1b   :  { %v723_v26 = vmul.f32 %v164_v14, %v677_v0  ;;  %v726_v27 = vmul.f32 %v164_v14, %v682_v1  ;;  %v82_v28 = vadd.f32 %v80_v20, %v77_v8  ;;  %v83_v29 = vadd.f32 %v81_v21, %v78_v9  ;;  %s762_s16 = sld [smem:[#allocation3 + $0x18]]  ;;  %s768_s17 = sld [smem:[#allocation3 + $0x6]] }
  0x1c   :  { %v101_v30 = vadd.f32 %v99_v22, %v96_v10  ;;  %v102_v31 = vadd.f32 %v100_v23, %v97_v11  ;;  %v122_v32 = vmul.f32 %v690_v6, %v121_v24  ;;  %v123_v33 = vmul.f32 %v695_v7, %v121_v24  ;;  %s774_s0 = sld [smem:[#allocation3 + $0x26]]  ;;  %s776_s19 = sld [smem:[#allocation3 + $0x27]] }
  0x1d   :  { %v145_v34 = vmul.f32 %v690_v6, %v144_v25  ;;  %v146_v35 = vmul.f32 %v695_v7, %v144_v25  ;;  %v84_v36 = vstv %s701_s4  ;;  %v103_v37 = vstv %s703_s5  ;;  %s778_s18 = sld [smem:[#allocation3 + $0x19]]  ;;  %s786_s20 = sld [smem:[#allocation3 + $0x10]] }
  0x1e   :  { %v167_v38 = vstv %s684_s27  ;;  %v748_v39 = vmul.f32 %v187_v15, %v677_v0  ;;  %v85_v40 = vadd.f32 %v84_v36, %v82_v28  ;;  %v86_v41 = vadd.f32 %v84_v36, %v83_v29  ;;  %s788_s21 = sld [smem:[#allocation3 + $0x7]]  ;;  %s790_s22 = sld [smem:[#allocation3 + $0x1a]] }
  0x1f   :  { %v104_v42 = vadd.f32 %v103_v37, %v101_v30  ;;  %v105_v43 = vadd.f32 %v103_v37, %v102_v31  ;;  %v124_v44 = vadd.f32 %v122_v32, %v119_v12  ;;  %v125_v45 = vadd.f32 %v123_v33, %v120_v13  ;;  %s793_s23 = sld [smem:[#allocation3 + $0x28]]  ;;  %s795_s24 = sld [smem:[#allocation3 + $0x29]] }
  0x20   :  { %v126_v46 = vstv %s709_s1  ;;  %v147_v47 = vadd.f32 %v145_v34, %v142_v18  ;;  %v87_v48 = vmax.f32 %v85_v40, 0.0  ;;  %v88_v49 = vmax.f32 %v86_v41, 0.0  ;;  %s802_s25 = sld [smem:[#allocation3 + $0x11]]  ;;  %s806_s26 = sld [smem:[#allocation3 + $0x2a]] }
  0x21   :  { %v148_v50 = vadd.f32 %v146_v35, %v143_v19  ;;  %v149_v51 = vstv %s711_s6  ;;  %v106_v52 = vmax.f32 %v104_v42, 0.0  ;;  %v107_v53 = vmax.f32 %v105_v43, 0.0  ;;  %s808_s27 = sld [smem:[#allocation3 + $0x8]]  ;;  %s810_s28 = sld [smem:[#allocation3 + $0x12]] }
  0x22   :  { %v127_v54 = vadd.f32 %v126_v46, %v124_v44  ;;  %v128_v55 = vadd.f32 %v126_v46, %v125_v45  ;;  %v89_v56 = vstv %s730_s8  ;;  %v108_v57 = vstv %s732_s9  ;;  %s812_s29 = sld [smem:[#allocation3 + $0x1b]]  ;;  %s826_s3 = sld [smem:[#allocation3 + $0x2c]] }
  0x23   :  { %v150_v58 = vadd.f32 %v149_v51, %v147_v47  ;;  %v151_v59 = vadd.f32 %v149_v51, %v148_v50  ;;  %v90_v60 = vmul.f32 %v89_v56, %v87_v48  ;;  %v91_v61 = vmul.f32 %v89_v56, %v88_v49  ;;  %s820_s30 = sld [smem:[#allocation3 + $0x2b]]  ;;  %s830_s4 = sld [smem:[#allocation3 + $0x1c]] }
  0x24   :  { %v109_v62 = vmul.f32 %v108_v57, %v106_v52  ;;  %v110_v63 = vmul.f32 %v108_v57, %v107_v53  ;;  %v129_v2 = vmax.f32 %v127_v54, 0.0  ;;  %v130_v3 = vmax.f32 %v128_v55, 0.0  ;;  %s833_s5 = sld [smem:[#allocation3 + $0x2d]]  ;;  %s840_s1 = sld [smem:[#allocation3 + $0x9]] }
  0x25   :  { %v131_v4 = vstv %s738_s10  ;;  %v189_v5 = vmul.f32 %v187_v15, %v682_v1  ;;  %v154_v8 = vstv %s740_s11  ;;  %v168_v9 = vmul.f32 %v690_v6, %v167_v38  ;;  %s847_s6 = sld [smem:[#allocation3 + $0x13]]  ;;  %s851_s8 = sld [smem:[#allocation3 + $0x2f]] }
  0x26   :  { %v169_v10 = vmul.f32 %v695_v7, %v167_v38  ;;  %v190_v11 = vstv %s728_s7  ;;  %v111_v12 = vadd.f32 %v109_v62, %v90_v60  ;;  %v112_v13 = vadd.f32 %v110_v63, %v91_v61  ;;  %s849_s7 = sld [smem:[#allocation3 + $0x2e]]  ;;  %s855_s9 = sld [smem:[#allocation3 + $0x1d]] }
  0x27   :  { %v152_v14 = vmax.f32 %v150_v58, 0.0  ;;  %v153_v16 = vmax.f32 %v151_v59, 0.0  ;;  %v92_v15 = vstv %s752_s12  ;;  %v113_v17 = vstv %s754_s13  ;;  %s859_s10 = sld [smem:[#allocation3 + $0x30]]  ;;  %s861_s11 = sld [smem:[#allocation3 + $0x31]] }
  0x28   :  { %v132_v18 = vmul.f32 %v131_v4, %v129_v2  ;;  %v133_v19 = vmul.f32 %v131_v4, %v130_v3  ;;  %v93_v20 = vmul.f32 %v92_v15, %v87_v48  ;;  %v94_v21 = vmul.f32 %v92_v15, %v88_v49  ;;  %s870_s12 = sld [smem:[#allocation3 + $0x32]]  ;;  %s872_s13 = sld [smem:[#allocation3 + $0x33]] }
  0x29   :  { %v114_v22 = vmul.f32 %v113_v17, %v106_v52  ;;  %v115_v23 = vmul.f32 %v113_v17, %v107_v53  ;;  %v136_v24 = vstv %s756_s14  ;;  %v159_v25 = vstv %s758_s15  ;;  %s875_s14 = sld [smem:[#allocation3 + $0x34]]  ;;  %s877_s15 = sld [smem:[#allocation3 + $0x35]] }
  0x2a   :  { %v170_v28 = vadd.f32 %v168_v9, %v723_v26  ;;  %v171_v29 = vadd.f32 %v169_v10, %v726_v27  ;;  %v137_v32 = vmul.f32 %v136_v24, %v129_v2  ;;  %v138_v33 = vmul.f32 %v136_v24, %v130_v3 }
  0x2b   :  { %v116_v30 = vadd.f32 %v114_v22, %v93_v20  ;;  %v117_v31 = vadd.f32 %v115_v23, %v94_v21  ;;  %v134_v34 = vadd.f32 %v132_v18, %v111_v12  ;;  %v135_v35 = vadd.f32 %v133_v19, %v112_v13 }
  0x2c   :  { %v155_v36 = vmul.f32 %v154_v8, %v152_v14  ;;  %v156_v37 = vmul.f32 %v154_v8, %v153_v16  ;;  %v160_v38 = vmul.f32 %v159_v25, %v152_v14  ;;  %v161_v27 = vmul.f32 %v159_v25, %v153_v16 }
  0x2d   :  { %v139_v26 = vadd.f32 %v137_v32, %v116_v30  ;;  %v172_v40 = vstv %s762_s16  ;;  %v140_v41 = vadd.f32 %v138_v33, %v117_v31  ;;  %v191_v44 = vmul.f32 %v690_v6, %v190_v11  ;;  %s589_s16 = sld [smem:[#allocation3 + $0x36]] }
  0x2e   :  { %v173_v42 = vadd.f32 %v172_v40, %v170_v28  ;;  %v174_v43 = vadd.f32 %v172_v40, %v171_v29  ;;  %v177_v45 = vstv %s774_s0  ;;  %v182_v46 = vstv %s776_s19 }
  0x2f   :  { %v192_v47 = vmul.f32 %v695_v7, %v190_v11  ;;  %v210_v48 = vstv %s768_s17  ;;  %v193_v51 = vadd.f32 %v191_v44, %v748_v39  ;;  %v195_v52 = vstv %s778_s18 }
  0x30   :  { %v175_v49 = vmax.f32 %v173_v42, 0.0  ;;  %v176_v50 = vmax.f32 %v174_v43, 0.0  ;;  %v157_v53 = vadd.f32 %v155_v36, %v134_v34  ;;  %v158_v54 = vadd.f32 %v156_v37, %v135_v35 }
  0x31   :  { %v162_v55 = vadd.f32 %v160_v38, %v139_v26  ;;  %v194_v56 = vadd.f32 %v192_v47, %v189_v5  ;;  %v163_v57 = vadd.f32 %v161_v27, %v140_v41  ;;  %v196_v61 = vadd.f32 %v195_v52, %v193_v51 }
  0x32   :  { %v178_v58 = vmul.f32 %v177_v45, %v175_v49  ;;  %v179_v59 = vmul.f32 %v177_v45, %v176_v50  ;;  %v183_v60 = vmul.f32 %v182_v46, %v175_v49  ;;  %v184_v39 = vmul.f32 %v182_v46, %v176_v50 }
  0x33   :  { %v197_v62 = vadd.f32 %v195_v52, %v194_v56  ;;  %v213_v63 = vstv %s786_s20  ;;  %v211_v2 = vmul.f32 %v210_v48, %v677_v0  ;;  %v212_v3 = vmul.f32 %v210_v48, %v682_v1 }
  0x34   :  { %v233_v4 = vstv %s788_s21  ;;  %v198_v5 = vmax.f32 %v196_v61, 0.0  ;;  %v214_v9 = vmul.f32 %v690_v6, %v213_v63  ;;  %v215_v10 = vmul.f32 %v695_v7, %v213_v63 }
  0x35   :  { %v199_v8 = vmax.f32 %v197_v62, 0.0  ;;  %v180_v11 = vadd.f32 %v178_v58, %v157_v53  ;;  %v200_v12 = vstv %s793_s23  ;;  %v205_v13 = vstv %s795_s24 }
  0x36   :  { %v218_v14 = vstv %s790_s22  ;;  %v181_v16 = vadd.f32 %v179_v59, %v158_v54  ;;  %v185_v15 = vadd.f32 %v183_v60, %v162_v55  ;;  %v186_v17 = vadd.f32 %v184_v39, %v163_v57 }
  0x37   :  { %v234_v18 = vmul.f32 %v233_v4, %v677_v0  ;;  %v216_v19 = vadd.f32 %v214_v9, %v211_v2  ;;  %v217_v20 = vadd.f32 %v215_v10, %v212_v3  ;;  %v235_v21 = vmul.f32 %v233_v4, %v682_v1 }
  0x38   :  { %v236_v22 = vstv %s802_s25  ;;  %v201_v23 = vmul.f32 %v200_v12, %v198_v5  ;;  %v202_v24 = vmul.f32 %v200_v12, %v199_v8  ;;  %v206_v25 = vmul.f32 %v205_v13, %v198_v5 }
  0x39   :  { %v223_v28 = vstv %s806_s26  ;;  %v219_v29 = vadd.f32 %v218_v14, %v216_v19  ;;  %v220_v30 = vadd.f32 %v218_v14, %v217_v20  ;;  %v237_v31 = vmul.f32 %v690_v6, %v236_v22 }
  0x3a   :  { %v238_v32 = vmul.f32 %v695_v7, %v236_v22  ;;  %v207_v33 = vmul.f32 %v205_v13, %v199_v8  ;;  %v241_v34 = vstv %s812_s29  ;;  %v256_v35 = vstv %s808_s27 }
  0x3b   :  { %v259_v36 = vstv %s810_s28  ;;  %v221_v37 = vmax.f32 %v219_v29, 0.0  ;;  %v222_v26 = vmax.f32 %v220_v30, 0.0  ;;  %v239_v38 = vadd.f32 %v237_v31, %v234_v18 }
  0x3c   :  { %v240_v27 = vadd.f32 %v238_v32, %v235_v21  ;;  %v257_v40 = vmul.f32 %v256_v35, %v677_v0  ;;  %v258_v41 = vmul.f32 %v256_v35, %v682_v1  ;;  %v260_v42 = vmul.f32 %v690_v6, %v259_v36 }
  0x3d   :  { %v261_v43 = vmul.f32 %v695_v7, %v259_v36  ;;  %v203_v44 = vadd.f32 %v201_v23, %v180_v11  ;;  %v204_v45 = vadd.f32 %v202_v24, %v181_v16  ;;  %v208_v46 = vadd.f32 %v206_v25, %v185_v15 }
  0x3e   :  { %v228_v47 = vstv %s820_s30  ;;  %v242_v48 = vadd.f32 %v241_v34, %v239_v38  ;;  %v243_v49 = vadd.f32 %v241_v34, %v240_v27  ;;  %v262_v50 = vadd.f32 %v260_v42, %v257_v40 }
  0x3f   :  { %v263_v51 = vadd.f32 %v261_v43, %v258_v41  ;;  %v209_v52 = vadd.f32 %v207_v33, %v186_v17  ;;  %v224_v53 = vmul.f32 %v223_v28, %v221_v37  ;;  %v225_v54 = vmul.f32 %v223_v28, %v222_v26 }
  0x40   :  { %v246_v55 = vstv %s826_s3  ;;  %v229_v56 = vmul.f32 %v228_v47, %v221_v37  ;;  %v244_v57 = vmax.f32 %v242_v48, 0.0  ;;  %v245_v58 = vmax.f32 %v243_v49, 0.0 }
  0x41   :  { %v264_v59 = vstv %s830_s4  ;;  %v230_v60 = vmul.f32 %v228_v47, %v222_v26  ;;  %v251_v39 = vstv %s833_s5  ;;  %v226_v63 = vadd.f32 %v224_v53, %v203_v44 }
  0x42   :  { %v265_v61 = vadd.f32 %v264_v59, %v262_v50  ;;  %v266_v62 = vadd.f32 %v264_v59, %v263_v51  ;;  %v247_v2 = vmul.f32 %v246_v55, %v244_v57  ;;  %v279_v3 = vstv %s840_s1 }
  0x43   :  { %v227_v4 = vadd.f32 %v225_v54, %v204_v45  ;;  %v231_v5 = vadd.f32 %v229_v56, %v208_v46  ;;  %v248_v8 = vmul.f32 %v246_v55, %v245_v58  ;;  %v252_v9 = vmul.f32 %v251_v39, %v244_v57 }
  0x44   :  { %v232_v10 = vadd.f32 %v230_v60, %v209_v52  ;;  %v253_v11 = vmul.f32 %v251_v39, %v245_v58  ;;  %v267_v12 = vmax.f32 %v265_v61, 0.0  ;;  %v268_v13 = vmax.f32 %v266_v62, 0.0 }
  0x45   :  { %v269_v14 = vstv %s849_s7  ;;  %v280_v16 = vmul.f32 %v279_v3, %v677_v0  ;;  %v281_v15 = vmul.f32 %v279_v3, %v682_v1  ;;  %v282_v17 = vstv %s847_s6 }
  0x46   :  { %v249_v18 = vadd.f32 %v247_v2, %v226_v63  ;;  %v274_v19 = vstv %s851_s8  ;;  %v250_v20 = vadd.f32 %v248_v8, %v227_v4  ;;  %v254_v21 = vadd.f32 %v252_v9, %v231_v5 }
  0x47   :  { %v283_v22 = vmul.f32 %v690_v6, %v282_v17  ;;  %v284_v23 = vmul.f32 %v695_v7, %v282_v17  ;;  %v255_v24 = vadd.f32 %v253_v11, %v232_v10  ;;  %v270_v25 = vmul.f32 %v269_v14, %v267_v12 }
  0x48   :  { %v271_v0 = vmul.f32 %v269_v14, %v268_v13  ;;  %v287_v28 = vstv %s855_s9  ;;  %v275_v1 = vmul.f32 %v274_v19, %v267_v12  ;;  %v276_v29 = vmul.f32 %v274_v19, %v268_v13 }
  0x49   :  { %v285_v30 = vadd.f32 %v283_v22, %v280_v16  ;;  %v286_v31 = vadd.f32 %v284_v23, %v281_v15  ;;  %v272_v6 = vadd.f32 %v270_v25, %v249_v18  ;;  %v292_v34 = vstv %s859_s10 }
  0x4a   :  { %v273_v7 = vadd.f32 %v271_v0, %v250_v20  ;;  %v297_v35 = vstv %s861_s11  ;;  %v277_v36 = vadd.f32 %v275_v1, %v254_v21  ;;  %v278_v37 = vadd.f32 %v276_v29, %v255_v24 }
  0x4b   :  { %v288_v32 = vadd.f32 %v287_v28, %v285_v30  ;;  %v289_v33 = vadd.f32 %v287_v28, %v286_v31  ;;  %v302_v43 = vstv %s870_s12  ;;  %v307_v44 = vstv %s872_s13 }
  0x4c   :  { %v312_v53 = vstv %s875_s14  ;;  %v315_v54 = vstv %s877_s15  ;;  %v320_v62 = vstv %s589_s16  ;;  %v638_v29 = vmov 683565275  }
  0x4d   :  { %v290_v26 = vmax.f32 %v288_v32, 0.0  ;;  %v291_v38 = vmax.f32 %v289_v33, 0.0  ;;  %v639_v31 = vmov 2475754826   ;;  %v640_v33 = vmov 2131351028  }
  0x4f   :  { %v293_v27 = vmul.f32 %v292_v34, %v290_v26  ;;  %v294_v40 = vmul.f32 %v292_v34, %v291_v38  ;;  %v298_v41 = vmul.f32 %v297_v35, %v290_v26  ;;  %v299_v42 = vmul.f32 %v297_v35, %v291_v38 }
  0x50   :  { %v642_v35 = vmov 920167782  }
  0x51   :  { %v295_v45 = vadd.f32 %v293_v27, %v272_v6  ;;  %v296_v46 = vadd.f32 %v294_v40, %v273_v7  ;;  %v300_v47 = vadd.f32 %v298_v41, %v277_v36  ;;  %v301_v48 = vadd.f32 %v299_v42, %v278_v37 }
  0x52   :  { %v641_v7 = vmov 2102212464   ;;  %v643_v42 = vmov 1326507024  }
  0x53   :  { %v303_v49 = vadd.f32 %v302_v43, %v295_v45  ;;  %v304_v50 = vadd.f32 %v302_v43, %v296_v46  ;;  %v308_v51 = vadd.f32 %v307_v44, %v300_v47  ;;  %v309_v52 = vadd.f32 %v307_v44, %v301_v48 }
  0x55   :  { %v305_v55 = vmax.f32 %v303_v49, 0.0  ;;  %v306_v56 = vmax.f32 %v304_v50, 0.0  ;;  %v310_v57 = vmax.f32 %v308_v51, 0.0  ;;  %v311_v58 = vmax.f32 %v309_v52, 0.0 }
  0x57   :  { %v313_v59 = vmul.f32 %v312_v53, %v305_v55  ;;  %v314_v60 = vmul.f32 %v312_v53, %v306_v56  ;;  %v316_v39 = vmul.f32 %v315_v54, %v310_v57  ;;  %v317_v61 = vmul.f32 %v315_v54, %v311_v58 }
  0x59   :  { %v318_v63 = vadd.f32 %v316_v39, %v313_v59  ;;  %v319_v2 = vadd.f32 %v317_v61, %v314_v60 }
  0x5b   :  { %v885_v3 = vadd.f32 %v320_v62, %v318_v63  ;;  %v887_v4 = vadd.f32 %v320_v62, %v319_v2 }
  0x5d   :  { %v323_v5 = vand.u32 2147483647, %v885_v3  ;;  %v326_v8 = vand.u32 2139095040, %v885_v3  ;;  %v426_v9 = vand.u32 2147483647, %v887_v4  ;;  %v429_v10 = vand.u32 2139095040, %v887_v4 }
  0x5e   :  { %vm325_vm14 = vcmp.lt.s32.totalorder %v885_v3, 0 }
  0x5f   :  { %v327_v11 = vshrl.u32 %v326_v8, 23  ;;  %v330_v12 = vand.u32 8388607, %v323_v5  ;;  %v430_v13 = vshrl.u32 %v429_v10, 23  ;;  %v433_v14 = vand.u32 8388607, %v426_v9 }
  0x60   :  { %vm948_vm15 = vcmp.le.f32.partialorder %v323_v5, 0.7853982 }
  0x61   :  { %v592_v16 = vadd.s32 4294967169, %v327_v11  ;;  %v596_v15 = vadd.s32 4294967169, %v430_v13  ;;  %v331_v18 = vor.u32 8388608, %v330_v12  ;;  %v434_v19 = vor.u32 8388608, %v433_v14 }
  0x63   :  { %v333_v17 = vadd.s32 1, %v592_v16  ;;  %v436_v20 = vadd.s32 1, %v596_v15  ;;  %v897_v25 = vshll.u32 %v331_v18, 8  ;;  %v899_v28 = vshll.u32 %v434_v19, 8 }
  0x65   :  { %vm334_vm0 = vcmp.gt.s32.totalorder %v333_v17, 0  ;;  %vm437_vm1 = vcmp.gt.s32.totalorder %v436_v20, 0 }
  0x66   :  { %v335_v21 = vsel %vm334_vm0, %v333_v17, 0  ;;  %v438_v24 = vsel %vm437_vm1, %v436_v20, 0  ;;  %vm428_vm0 = vcmp.lt.s32.totalorder %v887_v4, 0  ;;  %vm960_vm1 = vcmp.le.f32.partialorder %v426_v9, 0.7853982 }
  0x67   :  { %v336_v22 = vshrl.u32 %v335_v21, 5  ;;  %v337_v23 = vand.u32 31, %v335_v21  ;;  %v440_v0 = vand.u32 31, %v438_v24  ;;  %v901_v37 = vshrl.u32 %v438_v24, 5 }
  0x69   :  { %v338_v1 = vsub.s32 32, %v337_v23  ;;  %v340_v30 = vshll.u32 %v638_v29, %v337_v23  ;;  %v343_v32 = vshll.u32 %v639_v31, %v337_v23  ;;  %v346_v6 = vshll.u32 %v640_v33, %v337_v23 }
  0x6a   :  { %v349_v34 = vshll.u32 %v641_v7, %v337_v23  ;;  %v352_v36 = vshll.u32 %v642_v35, %v337_v23  ;;  %vm355_vm2 = vcmp.lt.s32.totalorder %v336_v22, 1  ;;  %vm356_vm3 = vcmp.lt.s32.totalorder %v336_v22, 2 }
  0x6b   :  { %v339_v26 = vshrl.u32 %v638_v29, %v338_v1  ;;  %v341_v38 = vshrl.u32 %v639_v31, %v338_v1  ;;  %v344_v27 = vshrl.u32 %v640_v33, %v338_v1  ;;  %v347_v40 = vshrl.u32 %v641_v7, %v338_v1 }
  0x6c   :  { %v350_v41 = vshrl.u32 %v642_v35, %v338_v1  ;;  %v353_v43 = vshrl.u32 %v643_v42, %v338_v1  ;;  %vm358_vm4 = vcmp.lt.s32.totalorder %v336_v22, 4  ;;  %v441_v47 = vsub.s32 32, %v440_v0 }
  0x6d   :  { %v342_v44 = vor.u32 %v341_v38, %v340_v30  ;;  %v345_v45 = vor.u32 %v344_v27, %v343_v32  ;;  %v348_v46 = vor.u32 %v347_v40, %v346_v6  ;;  %vm357_vm5 = vcmp.lt.s32.totalorder %v336_v22, 3 }
  0x6e   :  { %v351_v48 = vor.u32 %v350_v41, %v349_v34  ;;  %v354_v49 = vor.u32 %v353_v43, %v352_v36  ;;  %v443_v50 = vshll.u32 %v638_v29, %v440_v0  ;;  %v446_v58 = vshll.u32 %v639_v31, %v440_v0 }
  0x6f   :  { %v359_v51 = vsel %vm355_vm2, %v339_v26, %v342_v44  ;;  %v360_v52 = vsel %vm358_vm4, %v348_v46, 2102212464  ;;  %v363_v53 = vsel %vm355_vm2, %v342_v44, %v345_v45  ;;  %v367_v54 = vsel %vm355_vm2, %v345_v45, %v348_v46 }
  0x70   :  { %v361_v55 = vsel %vm357_vm5, %v345_v45, %v360_v52  ;;  %v364_v56 = vsel %vm358_vm4, %v351_v48, 920167782  ;;  %v368_v57 = vsel %vm358_vm4, %v354_v49, 1326507024  ;;  %v442_v39 = vshrl.u32 %v638_v29, %v441_v47 }
  0x71   :  { %v365_v59 = vsel %vm357_vm5, %v348_v46, %v364_v56  ;;  %v369_v60 = vsel %vm357_vm5, %v351_v48, %v368_v57  ;;  %v444_v61 = vshrl.u32 %v639_v31, %v441_v47  ;;  %v362_v62 = vsel %vm356_vm3, %v359_v51, %v361_v55 }
  0x72   :  { %v366_v63 = vsel %vm356_vm3, %v363_v53, %v365_v59  ;;  %v370_v2 = vsel %vm356_vm3, %v367_v54, %v369_v60  ;;  %v447_v8 = vshrl.u32 %v640_v33, %v441_v47  ;;  %v449_v15 = vshll.u32 %v640_v33, %v440_v0 }
  0x73   :  { %v910_v10 = vmul.u32.u64.low %v897_v25, %v370_v2  ;;  %v911_v11 = vmul.u32.u64.high %v897_v25, %v370_v2, %v910_v10  ;;  %v914_v12 = vmul.u32.u64.low %v897_v25, %v366_v63  ;;  %v915_v13 = vmul.u32.u64.high %v897_v25, %v366_v63, %v914_v12 }
  0x74   :  { %v445_v14 = vor.u32 %v444_v61, %v443_v50  ;;  %v448_v16 = vor.u32 %v447_v8, %v446_v58  ;;  %v450_v17 = vshrl.u32 %v641_v7, %v441_v47  ;;  %v452_v18 = vshll.u32 %v641_v7, %v440_v0 }
  0x75   :  { %v453_v19 = vshrl.u32 %v642_v35, %v441_v47  ;;  %v455_v20 = vshll.u32 %v642_v35, %v440_v0  ;;  %v456_v21 = vshrl.u32 %v643_v42, %v441_v47  ;;  %v378_v22 = vmul.u32 %v897_v25, %v362_v62 }
  0x76   :  { %v451_v23 = vor.u32 %v450_v17, %v449_v15  ;;  %vm458_vm6 = vcmp.lt.s32.totalorder %v901_v37, 1  ;;  %vm459_vm7 = vcmp.lt.s32.totalorder %v901_v37, 2  ;;  %vm380_vm8 = vc.u32 %v911_v11, %v914_v12 }
  0x77   :  { %v381_v24 = vadd.s32 1, %v915_v13  ;;  %v454_v1 = vor.u32 %v453_v19, %v452_v18  ;;  %vm460_vm9 = vcmp.lt.s32.totalorder %v901_v37, 3  ;;  %v457_v29 = vor.u32 %v456_v21, %v455_v20 }
  0x78   :  { %vm461_vm10 = vcmp.lt.s32.totalorder %v901_v37, 4  ;;  %v462_v30 = vsel %vm458_vm6, %v442_v39, %v445_v14  ;;  %v466_v0 = vsel %vm458_vm6, %v445_v14, %v448_v16  ;;  %v470_v33 = vsel %vm458_vm6, %v448_v16, %v451_v23 }
  0x79   :  { %v382_v31 = vsel %vm380_vm8, %v381_v24, %v915_v13  ;;  %v463_v25 = vsel %vm461_vm10, %v451_v23, 2102212464  ;;  %v467_v32 = vsel %vm461_vm10, %v454_v1, 920167782  ;;  %v471_v35 = vsel %vm461_vm10, %v457_v29, 1326507024 }
  0x7a   :  { %v383_v6 = vadd.s32 %v382_v31, %v378_v22  ;;  %v464_v7 = vsel %vm460_vm9, %v448_v16, %v463_v25  ;;  %v468_v34 = vsel %vm460_vm9, %v451_v23, %v467_v32  ;;  %v472_v38 = vsel %vm460_vm9, %v454_v1, %v471_v35 }
  0x7b   :  { %v465_v36 = vsel %vm459_vm7, %v462_v30, %v464_v7  ;;  %v469_v26 = vsel %vm459_vm7, %v466_v0, %v468_v34  ;;  %v473_v40 = vsel %vm459_vm7, %v470_v33, %v472_v38  ;;  %v379_v59 = vadd.s32 %v914_v12, %v911_v11 }
  0x7c   :  { %v384_v27 = vadd.s32 536870912, %v383_v6  ;;  %v932_v41 = vmul.u32.u64.low %v899_v28, %v469_v26  ;;  %v933_v42 = vmul.u32.u64.high %v899_v28, %v469_v26, %v932_v41  ;;  %v481_v46 = vmul.u32 %v899_v28, %v465_v36 }
  0x7d   :  { %v936_v43 = vmul.u32.u64.low %v899_v28, %v473_v40  ;;  %v937_v44 = vmul.u32.u64.high %v899_v28, %v473_v40, %v936_v43  ;;  %vm415_vm5 = vweird.f32 %v885_v3  ;;  %vm518_vm9 = vweird.f32 %v887_v4 }
  0x7e   :  { %v385_v45 = vshrl.u32 %v384_v27, 30  ;;  %v484_v48 = vadd.s32 1, %v933_v42 }
  0x7f   :  { %vm483_vm11 = vc.u32 %v937_v44, %v932_v41  ;;  %v482_v18 = vadd.s32 %v932_v41, %v937_v44 }
  0x80   :  { %v386_v47 = vshll.u32 %v385_v45, 30  ;;  %v485_v37 = vsel %vm483_vm11, %v484_v48, %v933_v42  ;;  %v409_v30 = vsub.s32 4, %v385_v45 }
  0x81   :  { %v486_v50 = vadd.s32 %v485_v37, %v481_v46 }
  0x82   :  { %v387_v49 = vsub.s32 %v383_v6, %v386_v47  ;;  %v410_v7 = vsel %vm325_vm14, %v409_v30, %v385_v45 }
  0x83   :  { %v487_v52 = vadd.s32 536870912, %v486_v50  ;;  %v412_v5 = vsel %vm948_vm15, 0, %v410_v7 }
  0x84   :  { %v389_v51 = vsub.s32 0, %v387_v49  ;;  %v416_v27 = vand.u32 3, %v412_v5 }
  0x85   :  { %v488_v54 = vshrl.u32 %v487_v52, 30 }
  0x86   :  { %v593_v53 = vmin.u32 %v389_v51, %v387_v49  ;;  %vm421_vm2 = vcmp.eq.s32.totalorder %v416_v27, 2  ;;  %vm418_vm3 = vcmp.eq.s32.totalorder %v416_v27, 0  ;;  %vm417_vm4 = vcmp.lt.s32.totalorder %v416_v27, 2 }
  0x87   :  { %v489_v56 = vshll.u32 %v488_v54, 30  ;;  %v512_v38 = vsub.s32 4, %v488_v54 }
  0x88   :  { %v391_v55 = vclz %v593_v53 }
  0x89   :  { %v490_v58 = vsub.s32 %v486_v50, %v489_v56  ;;  %v513_v42 = vsel %vm428_vm0, %v512_v38, %v488_v54 }
  0x8a   :  { %v594_v57 = vadd.s32 4294967294, %v391_v55  ;;  %v515_v46 = vsel %vm960_vm1, 0, %v513_v42 }
  0x8b   :  { %v492_v60 = vsub.s32 0, %v490_v58  ;;  %v519_v37 = vand.u32 3, %v515_v46 }
  0x8c   :  { %vm595_vm12 = vcmp.lt.s32.totalorder %v594_v57, 0 }
  0x8d   :  { %v394_v28 = vsel %vm595_vm12, 0, %v594_v57  ;;  %v597_v63 = vmin.u32 %v492_v60, %v490_v58  ;;  %vm524_vm6 = vcmp.eq.s32.totalorder %v519_v37, 2  ;;  %vm521_vm7 = vcmp.eq.s32.totalorder %v519_v37, 0 }
  0x8e   :  { %v395_v39 = vsub.s32 32, %v394_v28  ;;  %v396_v61 = vshll.u32 %v387_v49, %v394_v28  ;;  %v399_v62 = vsub.s32 4294967266, %v394_v28  ;;  %vm520_vm8 = vcmp.lt.s32.totalorder %v519_v37, 2 }
  0x8f   :  { %v494_v10 = vclz %v597_v63 }
  0x90   :  { %v397_v2 = vshrl.u32 %v379_v59, %v395_v39  ;;  %v400_v8 = vadd.s32 127, %v399_v62 }
  0x91   :  { %v598_v16 = vadd.s32 4294967294, %v494_v10 }
  0x92   :  { %v398_v13 = vor.u32 %v397_v2, %v396_v61  ;;  %v401_v14 = vshll.u32 %v400_v8, 23 }
  0x93   :  { %vm599_vm13 = vcmp.lt.s32.totalorder %v598_v16, 0 }
  0x94   :  { %v402_v15 = vor.u32 4788187, %v401_v14  ;;  %v405_v17 = vcvt.s32.f32 %v398_v13  ;;  %v497_v11 = vsel %vm599_vm13, 0, %v598_v16 }
  0x95   :  { %v498_v12 = vsub.s32 32, %v497_v11  ;;  %v499_v20 = vshll.u32 %v490_v58, %v497_v11  ;;  %v502_v21 = vsub.s32 4294967266, %v497_v11 }
  0x96   :  { %v403_v19 = vand.u32 2147483647, %v402_v15 }
  0x97   :  { %v500_v23 = vshrl.u32 %v482_v18, %v498_v12  ;;  %v503_v24 = vadd.s32 127, %v502_v21 }
  0x98   :  { %v406_v22 = vmul.f32 %v405_v17, %v403_v19 }
  0x99   :  { %v501_v0 = vor.u32 %v500_v23, %v499_v20  ;;  %v504_v31 = vshll.u32 %v503_v24, 23 }
  0x9a   :  { %v407_v29 = vxor.u32 2147483648, %v406_v22 }
  0x9b   :  { %v505_v33 = vor.u32 4788187, %v504_v31  ;;  %v508_v6 = vcvt.s32.f32 %v501_v0 }
  0x9c   :  { %v408_v25 = vsel %vm325_vm14, %v407_v29, %v406_v22 }
  0x9d   :  { %v411_v32 = vsel %vm948_vm15, %v885_v3, %v408_v25  ;;  %v506_v34 = vand.u32 2147483647, %v505_v33 }
  0x9e   :  { %615 = vcosq.f32 %v411_v32 }
  0x9f   :  { %617 = vsinq.f32 %v411_v32  ;;  %v509_v35 = vmul.f32 %v508_v6, %v506_v34 }
  0xa1   :  { %v510_v26 = vxor.u32 2147483648, %v509_v35 }
  0xa3   :  { %v511_v40 = vsel %vm428_vm0, %v510_v26, %v509_v35 }
  0xa4   :  { %v514_v41 = vsel %vm960_vm1, %v887_v4, %v511_v40 }
  0xa5   :  { %619 = vcosq.f32 %v514_v41 }
  0xa6   :  { %621 = vsinq.f32 %v514_v41 }
  0xa8   :  { %v616_v43 = vpop.eup %615 }
  0xa9   :  { %v618_v44 = vpop.eup %617  ;;  %v422_v45 = vxor.u32 2147483648, %v616_v43 }
  0xaa   :  { %v419_v9 = vxor.u32 2147483648, %v618_v44 }
  0xab   :  { %v423_v47 = vsel %vm421_vm2, %v422_v45, %v618_v44 }
  0xac   :  { %v420_v48 = vsel %vm418_vm3, %v616_v43, %v419_v9 }
  0xad   :  { %v424_v49 = vsel %vm417_vm4, %v420_v48, %v423_v47 }
  0xae   :  { %v425_v50 = vsel %vm415_vm5, nan, %v424_v49 }
  0xaf   :  { %529 = vst [vmem:[%s979_s2] sm:$0xff] %v425_v50  ;;  %v620_v51 = vpop.eup %619 }
  0xb0   :  { %v622_v52 = vpop.eup %621  ;;  %v525_v53 = vxor.u32 2147483648, %v620_v51 }
  0xb1   :  { %v522_v54 = vxor.u32 2147483648, %v622_v52 }
  0xb2   :  { %v526_v55 = vsel %vm524_vm6, %v525_v53, %v622_v52 }
  0xb3   :  { %v523_v3 = vsel %vm521_vm7, %v620_v51, %v522_v54 }
  0xb4   :  { %v527_v56 = vsel %vm520_vm8, %v523_v3, %v526_v55 }
  0xb5   :  { %v528_v57 = vsel %vm518_vm9, nan, %v527_v56 }
  0xb6   :  { %530 = vst [vmem:[%s979_s2 + $0x8] sm:$0xff] %v528_v57 }

</bundles_post_ra>
